<compile_context>
chip_gen: v7x
topology: tpu7x:2x2x1
jax: 0.10.0
libtpu: 0.0.40
codegen_flags: <defaults>
</compile_context>

<pallas_src>
import math
import jax
import jax.numpy as jnp
from jax.experimental import pallas as pl
from jax.experimental.pallas import tpu as pltpu


# --------------------------------------------------------------------------
# Kernel
# --------------------------------------------------------------------------
def mlp_kernel(x_ref, w1_ref, b1_ref, w2_ref, b2_ref, o_ref, acc_ref):
    """Grid = (batch_tile i [parallel], hidden_chunk h [arbitrary]).

    For each hidden chunk: compute its slice of relu(x @ W1 + b1) and
    immediately accumulate its contribution to the second matmul into the
    f32 accumulator scratch.  Finalize (bias + sigmoid + store) on the last
    hidden chunk.
    """
    h_idx = pl.program_id(1)

    @pl.when(h_idx == 0)
    def _():
        acc_ref[...] = jnp.zeros_like(acc_ref)

    # First linear (MXU, f32 accumulation) + bias + ReLU in f32.
    h = jnp.dot(x_ref[...], w1_ref[...], preferred_element_type=jnp.float32)
    h = jnp.maximum(h + b1_ref[0:1, :], 0.0)          # [TB, TH] + [1, TH]

    # Second linear: feed the MXU in the weights' dtype, accumulate in f32.
    acc_ref[...] += jnp.dot(h.astype(w2_ref.dtype), w2_ref[...],
                            preferred_element_type=jnp.float32)

    @pl.when(h_idx == pl.num_programs(1) - 1)
    def _():
        o = jax.nn.sigmoid(acc_ref[...] + b2_ref[0:1, :])   # [TB, Cp] + [1, Cp]
        o_ref[...] = o.astype(o_ref.dtype)


# --------------------------------------------------------------------------
# Helpers
# --------------------------------------------------------------------------
def _round_up(x, m):
    return ((x + m - 1) // m) * m


def _cdiv(a, b):
    return -(-a // b)


def _tpu_generation():
    try:
        kind = jax.devices()[0].device_kind.lower()
    except Exception:
        return 0
    for g in (7, 6, 5, 4, 3, 2):
        if ("v%d" % g) in kind or ("tpu%d" % g) in kind:
            return g
    return 0


def _vmem_capacity_bytes(gen):
    try:
        cap = int(pltpu.get_tpu_info().vmem_capacity_bytes)
        if cap > 0:
            return cap
    except Exception:
        pass
    if gen >= 7:
        return 64 << 20       # v7x: 64 MiB / TensorCore
    if gen in (5, 6):
        return 128 << 20      # v5e / v6e: 128 MiB
    return 64 << 20           # unknown: be conservative


def _spec(shape, index_map, buffers=2):
    """BlockSpec with an explicit buffer count; Buffered(1) pins resident
    operands to a single VMEM buffer (no wasted double-buffer)."""
    if buffers == 2:
        return pl.BlockSpec(shape, index_map)
    try:
        return pl.BlockSpec(shape, index_map, pipeline_mode=pl.Buffered(buffers))
    except Exception:
        # Older Pallas without pipeline_mode: fall back to default buffering.
        return pl.BlockSpec(shape, index_map)


def _pad_cast(a, shape, dtype):
    """Zero-pad `a` to `shape` and cast; skip the padded copy when aligned."""
    if tuple(a.shape) == tuple(shape):
        return a if a.dtype == dtype else a.astype(dtype)
    out = jnp.zeros(shape, dtype)
    idx = tuple(slice(0, s) for s in a.shape)
    return out.at[idx].set(a.astype(dtype))


# --------------------------------------------------------------------------
# Wrapper
# --------------------------------------------------------------------------
def net_forward(x, w1, b1, w2, b2, *, block_b=None, block_h=None,
                use_bf16=True, out_dtype=jnp.float32):
    """x: [B, F]. Weights pre-transposed vs. PyTorch: w1 [F, H], w2 [H, C].
    Biases b1 [H] (or [1, H]), b2 [C] (or [1, C]). Returns [B, C] out_dtype."""
    B, F = x.shape
    H = w1.shape[1]
    C = w2.shape[1]

    gen = _tpu_generation()
    vmem_cap = _vmem_capacity_bytes(gen)

    cdt = jnp.bfloat16 if use_bf16 else jnp.float32
    itm = jnp.dtype(cdt).itemsize
    out_itm = jnp.dtype(out_dtype).itemsize

    # N-dim alignment: v6e/v7x MXU is 2x256x256 -> 256-wide N tiles when the
    # real dims are big enough; otherwise the standard 128 lanes.
    n_align_h = 256 if (gen >= 6 and H >= 256) else 128
    n_align_c = 256 if (gen >= 6 and C >= 256) else 128
    Fp = _round_up(F, 128)
    Cp = _round_up(C, n_align_c)

    # Batch tile: big tiles amortize per-grid-step overhead; the 128-MiB chips
    # (v5e/v6e) comfortably fit 512-row tiles, keep 256 on v7x (64 MiB).
    if block_b is None:
        block_b = 512 if vmem_cap >= (100 << 20) else 256
    TB = min(block_b, _round_up(B, 8))
    if gen >= 7:
        # Megacore: make sure the "parallel" batch axis has >= 2 tiles.
        rb = _round_up(B, 8)
        if rb >= 16 and _round_up(B, TB) // TB < 2:
            TB = _round_up(_cdiv(rb, 2), 8)

    budget = int(0.70 * vmem_cap)

    def footprint(tb, th, nh):
        n_w_buf = 1 if nh == 1 else 2           # resident vs. streaming weights
        return (2 * tb * Fp * itm               # x tile, double-buffered
                + n_w_buf * (Fp * th + th * Cp) * itm   # w1 / w2 blocks
                + n_w_buf * 8 * th * 4                  # b1 block
                + 1 * 8 * Cp * 4                        # b2 (always resident)
                + 2 * tb * Cp * out_itm                 # out tile, double-buffered
                + tb * Cp * 4                           # f32 accumulator scratch
                + tb * th * (4 + itm))                  # live hidden values

    # Choose hidden-chunk size (and shrink the batch tile if even the minimal
    # chunk does not fit the VMEM budget).
    if block_h is not None:
        TH = _round_up(block_h, n_align_h)
        NH = _cdiv(H, TH)
    else:
        while True:
            nh_try = 1
            while True:
                TH = _round_up(_cdiv(H, nh_try), n_align_h)
                NH = _cdiv(H, TH)
                if footprint(TB, TH, NH) <= budget or TH <= n_align_h:
                    break
                nh_try *= 2
            if footprint(TB, TH, NH) <= budget or TB <= 8:
                break
            TB = max(8, _round_up(TB // 2, 8))

    Hp = NH * TH
    Bp = _round_up(B, TB)
    NB = Bp // TB
    w_buf = 1 if NH == 1 else 2   # constant index_map -> single buffer

    # ---- padded / cast operands (skip the copy when already aligned) ----
    # Zero padding is exact: padded x cols x padded w1 rows contribute 0;
    # padded hidden cols are relu(0+0)=0 and hit zero rows of w2; padded
    # output cols / batch rows are sliced off.
    xp = _pad_cast(x, (Bp, Fp), cdt)
    w1p = _pad_cast(w1, (Fp, Hp), cdt)
    w2p = _pad_cast(w2, (Hp, Cp), cdt)
    b1_2d = jnp.broadcast_to(jnp.reshape(b1, (1, -1)).astype(jnp.float32), (8, H))
    b2_2d = jnp.broadcast_to(jnp.reshape(b2, (1, -1)).astype(jnp.float32), (8, C))
    b1p = _pad_cast(b1_2d, (8, Hp), jnp.float32)
    b2p = _pad_cast(b2_2d, (8, Cp), jnp.float32)

    # ---- cost estimate (advisory, helps XLA schedule around the call) ----
    flops = 2 * Bp * (Fp * Hp + Hp * Cp)
    w_bytes = (Fp * Hp + Hp * Cp) * itm
    bytes_accessed = (Bp * Fp * itm
                      + (w_bytes if NH == 1 else NB * w_bytes)
                      + 8 * (Hp + Cp) * 4
                      + Bp * Cp * out_itm)
    cost = pl.CostEstimate(flops=flops, transcendentals=Bp * Cp,
                           bytes_accessed=bytes_accessed)

    # ---- VMEM limit: derived from the true footprint, generation-aware ----
    fp = footprint(TB, TH, NH)
    hard_cap = int(0.92 * vmem_cap)          # ~56 MiB on v7x, ~110 MiB on v5e/v6e
    vmem_limit = int(min(hard_cap, max(16 << 20, int(1.4 * fp))))

    in_specs = [
        pl.BlockSpec((TB, Fp), lambda i, h: (i, 0)),          # x: batch-tiled
        _spec((Fp, TH), lambda i, h: (0, h), w_buf),          # w1
        _spec((8, TH), lambda i, h: (0, h), w_buf),           # b1
        _spec((TH, Cp), lambda i, h: (h, 0), w_buf),          # w2
        _spec((8, Cp), lambda i, h: (0, 0), 1),               # b2: resident
    ]
    out_specs = pl.BlockSpec((TB, Cp), lambda i, h: (i, 0))

    out_p = pl.pallas_call(
        mlp_kernel,
        out_shape=jax.ShapeDtypeStruct((Bp, Cp), out_dtype),
        grid=(NB, NH),
        in_specs=in_specs,
        out_specs=out_specs,
        scratch_shapes=[pltpu.VMEM((TB, Cp), jnp.float32)],
        compiler_params=pltpu.CompilerParams(
            dimension_semantics=("parallel", "arbitrary"),
            vmem_limit_bytes=vmem_limit,
        ),
        cost_estimate=cost,
    )(xp, w1p, b1p, w2p, b2p)

    return out_p[:B, :C]


# --------------------------------------------------------------------------
# Reference + test harness
# --------------------------------------------------------------------------
def _ref_forward(x, w1, b1, w2, b2):
    return jax.nn.sigmoid(
        jnp.maximum(x @ w1 + b1.reshape(1, -1), 0.0) @ w2 + b2.reshape(1, -1))


def _make_params(key, B, F, H, C):
    kx, kw1, kb1, kw2, kb2 = jax.random.split(key, 5)
    bound1 = 1.0 / math.sqrt(F)
    bound2 = 1.0 / math.sqrt(H)
    x = jax.random.normal(kx, (B, F), dtype=jnp.float32)
    w1 = jax.random.uniform(kw1, (F, H), minval=-bound1, maxval=bound1,
                            dtype=jnp.float32)
    b1 = jax.random.uniform(kb1, (H,), minval=-bound1, maxval=bound1,
                            dtype=jnp.float32)
    w2 = jax.random.uniform(kw2, (H, C), minval=-bound2, maxval=bound2,
                            dtype=jnp.float32)
    b2 = jax.random.uniform(kb2, (C,), minval=-bound2, maxval=bound2,
                            dtype=jnp.float32)
    return x, w1, b1, w2, b2


if __name__ == "__main__":
    key = jax.random.PRNGKey(0)
    k0, k1 = jax.random.split(key)

    # Small shapes consistent with Net(n_features, n_hidden, n_classes).
    B, F, H, C = 8, 32, 64, 16
    x, w1, b1, w2, b2 = _make_params(k0, B, F, H, C)

    # f32 MXU path: tight tolerance vs. pure-JAX reference.
    out_f32 = net_forward(x, w1, b1, w2, b2, use_bf16=False)
    jax.block_until_ready(out_f32)
    ref = _ref_forward(x, w1, b1, w2, b2)
    assert out_f32.shape == (B, C)
    assert jnp.allclose(out_f32, ref, atol=1e-5, rtol=1e-5)

    # bf16 MXU-operand path (default): looser tolerance vs. f32 reference.
    out_bf16 = net_forward(x, w1, b1, w2, b2, use_bf16=True)
    jax.block_until_ready(out_bf16)
    assert jnp.allclose(out_bf16, ref, atol=2e-2, rtol=2e-2)

    # Non-aligned shapes + forced hidden-chunking (exercises the reduction
    # grid axis, accumulator scratch and streaming-weight path).
    B2, F2, H2, C2 = 13, 33, 300, 5
    x2, w1b, b1b, w2b, b2b = _make_params(k1, B2, F2, H2, C2)
    out2 = net_forward(x2, w1b, b1b, w2b, b2b, use_bf16=True, block_h=128)
    jax.block_until_ready(out2)
    ref2 = _ref_forward(x2, w1b, b1b, w2b, b2b)
    assert out2.shape == (B2, C2)
    assert jnp.allclose(out2, ref2, atol=2e-2, rtol=2e-2)

    print("KERNEL_OK")
</pallas_src>

<mosaic_0001>
module attributes {stable_mosaic.version = 11 : i64} {
  func.func @mlp_kernel(%arg0: i32, %arg1: i32, %arg2: memref<8x128xf32, #tpu.memory_space<vmem>>, %arg3: memref<128x128xf32, #tpu.memory_space<vmem>>, %arg4: memref<8x128xf32, #tpu.memory_space<vmem>>, %arg5: memref<128x128xf32, #tpu.memory_space<vmem>>, %arg6: memref<8x128xf32, #tpu.memory_space<vmem>>, %arg7: memref<8x128xf32, #tpu.memory_space<vmem>>, %arg8: memref<8x128xf32, #tpu.memory_space<vmem>>) attributes {dimension_semantics = [#tpu.dimension_semantics<parallel>, #tpu.dimension_semantics<arbitrary>], iteration_bounds = array<i64: 1, 1>, scalar_prefetch = 0 : i64, scratch_operands = 1 : i64, tpu.core_type = #tpu.core_type<tc>, window_params = [{transform_indices = @transform_0, window_bounds = array<i64: 8, 128>}, {pipeline_mode = #tpu.pipeline_mode<synchronous>, transform_indices = @transform_1, window_bounds = array<i64: 128, 128>}, {pipeline_mode = #tpu.pipeline_mode<synchronous>, transform_indices = @transform_2, window_bounds = array<i64: 8, 128>}, {pipeline_mode = #tpu.pipeline_mode<synchronous>, transform_indices = @transform_3, window_bounds = array<i64: 128, 128>}, {pipeline_mode = #tpu.pipeline_mode<synchronous>, transform_indices = @transform_4, window_bounds = array<i64: 8, 128>}, {transform_indices = @transform_5, window_bounds = array<i64: 8, 128>}]} {
    %c0_i32 = arith.constant 0 : i32
    %0 = arith.cmpi eq, %arg1, %c0_i32 : i32
    %1 = arith.extui %0 : i1 to i32
    %c0_i32_0 = arith.constant 0 : i32
    %2 = arith.cmpi ne, %1, %c0_i32_0 : i32
    scf.if %2 {
      %cst_16 = arith.constant 0.000000e+00 : f32
      %19 = vector.broadcast %cst_16 : f32 to vector<8x128xf32>
      %c0_17 = arith.constant 0 : index
      %c0_18 = arith.constant 0 : index
      %20 = vector.load %arg8[%c0_17, %c0_18] : memref<8x128xf32, #tpu.memory_space<vmem>>, vector<8x128xf32>
      tpu.vector_store %arg8[%c0_17, %c0_18], %19 {strides = array<i32>} : memref<8x128xf32, #tpu.memory_space<vmem>>, vector<8x128xf32>,
    } else {
    }
    %c0 = arith.constant 0 : index
    %c0_1 = arith.constant 0 : index
    %3 = vector.load %arg2[%c0, %c0_1] : memref<8x128xf32, #tpu.memory_space<vmem>>, vector<8x128xf32>
    %c0_2 = arith.constant 0 : index
    %c0_3 = arith.constant 0 : index
    %4 = vector.load %arg3[%c0_2, %c0_3] : memref<128x128xf32, #tpu.memory_space<vmem>>, vector<128x128xf32>
    %cst = arith.constant dense<0.000000e+00> : vector<8x128xf32>
    %5 = tpu.matmul %3, %4, %cst {dimension_numbers = #tpu.dot_dimension_numbers<[1], [0], [0], [1], [0, 0, 1, 1], [], []>} : vector<8x128xf32>, vector<128x128xf32>, vector<8x128xf32> -> vector<8x128xf32>
    %c0_4 = arith.constant 0 : index
    %c0_5 = arith.constant 0 : index
    %6 = vector.load %arg4[%c0_4, %c0_5] : memref<8x128xf32, #tpu.memory_space<vmem>>, vector<1x128xf32>
    %7 = vector.broadcast %6 : vector<1x128xf32> to vector<8x128xf32>
    %8 = arith.addf %5, %7 : vector<8x128xf32>
    %cst_6 = arith.constant 0.000000e+00 : f32
    %9 = vector.broadcast %cst_6 : f32 to vector<8x128xf32>
    %10 = arith.maximumf %8, %9 : vector<8x128xf32>
    %c0_7 = arith.constant 0 : index
    %c0_8 = arith.constant 0 : index
    %11 = vector.load %arg8[%c0_7, %c0_8] : memref<8x128xf32, #tpu.memory_space<vmem>>, vector<8x128xf32>
    %c0_9 = arith.constant 0 : index
    %c0_10 = arith.constant 0 : index
    %12 = vector.load %arg5[%c0_9, %c0_10] : memref<128x128xf32, #tpu.memory_space<vmem>>, vector<128x128xf32>
    %cst_11 = arith.constant dense<0.000000e+00> : vector<8x128xf32>
    %13 = tpu.matmul %10, %12, %cst_11 {dimension_numbers = #tpu.dot_dimension_numbers<[1], [0], [0], [1], [0, 0, 1, 1], [], []>} : vector<8x128xf32>, vector<128x128xf32>, vector<8x128xf32> -> vector<8x128xf32>
    %14 = arith.addf %11, %13 : vector<8x128xf32>
    %c0_12 = arith.constant 0 : index
    %c0_13 = arith.constant 0 : index
    %15 = vector.load %arg8[%c0_12, %c0_13] : memref<8x128xf32, #tpu.memory_space<vmem>>, vector<8x128xf32>
    tpu.vector_store %arg8[%c0_12, %c0_13], %14 {strides = array<i32>} : memref<8x128xf32, #tpu.memory_space<vmem>>, vector<8x128xf32>,
    %c0_i32_14 = arith.constant 0 : i32
    %16 = arith.cmpi eq, %arg1, %c0_i32_14 : i32
    %17 = arith.extui %16 : i1 to i32
    %c0_i32_15 = arith.constant 0 : i32
    %18 = arith.cmpi ne, %17, %c0_i32_15 : i32
    scf.if %18 {
      %c0_16 = arith.constant 0 : index
      %c0_17 = arith.constant 0 : index
      %19 = vector.load %arg8[%c0_16, %c0_17] : memref<8x128xf32, #tpu.memory_space<vmem>>, vector<8x128xf32>
      %c0_18 = arith.constant 0 : index
      %c0_19 = arith.constant 0 : index
      %20 = vector.load %arg6[%c0_18, %c0_19] : memref<8x128xf32, #tpu.memory_space<vmem>>, vector<1x128xf32>
      %21 = vector.broadcast %20 : vector<1x128xf32> to vector<8x128xf32>
      %22 = arith.addf %19, %21 : vector<8x128xf32>
      %23 = arith.negf %22 : vector<8x128xf32>
      %24 = math.exp %23 : vector<8x128xf32>
      %cst_20 = arith.constant 1.000000e+00 : f32
      %25 = vector.broadcast %cst_20 : f32 to vector<8x128xf32>
      %26 = arith.addf %25, %24 : vector<8x128xf32>
      %27 = arith.divf %25, %26 : vector<8x128xf32>
      %c0_21 = arith.constant 0 : index
      %c0_22 = arith.constant 0 : index
      %28 = vector.load %arg7[%c0_21, %c0_22] : memref<8x128xf32, #tpu.memory_space<vmem>>, vector<8x128xf32>
      tpu.vector_store %arg7[%c0_21, %c0_22], %27 {strides = array<i32>} : memref<8x128xf32, #tpu.memory_space<vmem>>, vector<8x128xf32>,
    } else {
    }
    return
  }
  func.func @transform_0(%arg0: i32, %arg1: i32) -> (i32, i32) {
    %c0_i32 = arith.constant 0 : i32
    %c0_i32_0 = arith.constant 0 : i32
    return %arg0, %c0_i32 : i32, i32
  }
  func.func @transform_1(%arg0: i32, %arg1: i32) -> (i32, i32) {
    %c0_i32 = arith.constant 0 : i32
    %c0_i32_0 = arith.constant 0 : i32
    return %c0_i32, %arg1 : i32, i32
  }
  func.func @transform_2(%arg0: i32, %arg1: i32) -> (i32, i32) {
    %c0_i32 = arith.constant 0 : i32
    %c0_i32_0 = arith.constant 0 : i32
    return %c0_i32, %arg1 : i32, i32
  }
  func.func @transform_3(%arg0: i32, %arg1: i32) -> (i32, i32) {
    %c0_i32 = arith.constant 0 : i32
    %c0_i32_0 = arith.constant 0 : i32
    return %arg1, %c0_i32 : i32, i32
  }
  func.func @transform_4(%arg0: i32, %arg1: i32) -> (i32, i32) {
    %c0_i32 = arith.constant 0 : i32
    %c0_i32_0 = arith.constant 0 : i32
    %c0_i32_1 = arith.constant 0 : i32
    return %c0_i32, %c0_i32_0 : i32, i32
  }
  func.func @transform_5(%arg0: i32, %arg1: i32) -> (i32, i32) {
    %c0_i32 = arith.constant 0 : i32
    %c0_i32_0 = arith.constant 0 : i32
    return %arg0, %c0_i32 : i32, i32
  }
}

</mosaic_0001>

<bundles_post_ra>
// kernel: tpu_custom_call.1
= control target key start
LH: loop header
LB: loop body
LE: loop exit
PB: predicated region body
PF: predicated region fallthrough
CT: control target
= control target key end

     0   :  { %10 = vsyncpa [#allocation4], 0  ;;  %s705_s0 = inlined_call_operand.hbm [shape: f32[8,128], index: 0, kind: input, shape index: {}]   ;;  %s706_s1 = inlined_call_operand.hbm [shape: f32[128,128], index: 1, kind: input, shape index: {}]   ;;  %s707_s2 = inlined_call_operand.hbm [shape: f32[8,128], index: 2, kind: input, shape index: {}]   ;;  %s708_s3 = inlined_call_operand.hbm [shape: f32[128,128], index: 3, kind: input, shape index: {}]   ;;  %s709_s4 = inlined_call_operand.vmem [shape: f32[8,128], index: 4, kind: input, shape index: {}]   ;;  %s710_s5 = inlined_call_operand.hbm [shape: f32[8,128], index: 5, kind: output, shape index: {}]  }
   0x1   :  { %11 = vsyncpa [#allocation7], 0 }
   0x2   :  { %12 = vsyncpa [#allocation10], 0 }
   0x3   :  { %13 = vsyncpa [#allocation5], 0  ;;  %s580_s18 = smov [#allocation6]   ;;  %s462_s22 = scalar_lea.hbm %s706_s1, 2048 }
   0x4   :  { %s29_s19 = sshll.u32 %s580_s18, 4  ;;  %p463_p0 = scmp.ne.s32.totalorder %s706_s1, %s462_s22  ;;  %s30_s19 = int_to_ptr.vmem [resolvable:$true] %s29_s19 }
   0x5   :  { %p466_p1 = scmp.lt.u32.totalorder %s462_s22, %s706_s1 }
   0x7   :  { %p468_p2 = pnand %p466_p1, %p463_p0 }
   0x9   :  { %471 = shalt.err (!%p468_p2)
}
   0xa   :  { %s472_s27 = scalar_lea.vmem %s30_s19, 2048  ;;  %p477_p4 = scmp.lt.s32.totalorder %s30_s19, %s30_s19 }
   0xb   :  { %p473_p3 = scmp.ne.s32.totalorder %s30_s19, %s472_s27  ;;  %p478_p5 = scmp.lt.s32.totalorder %s472_s27, %s472_s27 }
   0xd   :  { %p479_p6 = por %p478_p5, %p477_p4 }
   0xf   :  { %p480_p7 = pnand %p479_p6, %p473_p3 }
  0x11   :  { %483 = shalt.err (!%p480_p7)
}
  0x12   :  { %s581_s28 = smov 128   ;;  %s582_s29 = smov 8  }
  0x13   :  { %35 = dma.hbm_to_vmem [thread:$0]  %s706_s1, 2048, %s30_s19, [#allocation7], %s581_s28, %s581_s28, %s582_s29  }
  0x14   :  { %s583_s7 = smov [#allocation3]   ;;  %s584_s9 = smov [#allocation8]  }
  0x15   :  { %s20_s8 = sshll.u32 %s583_s7, 4  ;;  %s42_s10 = sshll.u32 %s584_s9, 4  ;;  %s21_s8 = int_to_ptr.vmem [resolvable:$true] %s20_s8  ;;  %s43_s10 = int_to_ptr.vmem [resolvable:$true] %s42_s10 }
  0x16   :  { %s484_s13 = scalar_lea.hbm %s705_s0, 128 }
  0x17   :  { %p485_p8 = scmp.ne.s32.totalorder %s705_s0, %s484_s13  ;;  %p488_p9 = scmp.lt.u32.totalorder %s484_s13, %s705_s0 }
  0x19   :  { %p490_p10 = pnand %p488_p9, %p485_p8 }
  0x1b   :  { %493 = shalt.err (!%p490_p10)
}
  0x1c   :  { %s494_s1 = scalar_lea.vmem %s21_s8, 128  ;;  %p499_p12 = scmp.lt.s32.totalorder %s21_s8, %s21_s8 }
  0x1d   :  { %p495_p11 = scmp.ne.s32.totalorder %s21_s8, %s494_s1  ;;  %p500_p13 = scmp.lt.s32.totalorder %s494_s1, %s494_s1 }
  0x1f   :  { %p501_p0 = por %p500_p13, %p499_p12 }
  0x21   :  { %p502_p1 = pnand %p501_p0, %p495_p11 }
  0x23   :  { %505 = shalt.err (!%p502_p1)
}
  0x24   :  { %23 = dma.hbm_to_vmem [thread:$0]  %s705_s0, 128, %s21_s8, [#allocation4]  }
  0x25   :  { %s506_s22 = scalar_lea.hbm %s707_s2, 128 }
  0x26   :  { %p507_p2 = scmp.ne.s32.totalorder %s707_s2, %s506_s22  ;;  %p510_p3 = scmp.lt.u32.totalorder %s506_s22, %s707_s2 }
  0x28   :  { %p512_p4 = pnand %p510_p3, %p507_p2 }
  0x2a   :  { %515 = shalt.err (!%p512_p4)
}
  0x2b   :  { %s516_s27 = scalar_lea.vmem %s43_s10, 128  ;;  %p521_p6 = scmp.lt.s32.totalorder %s43_s10, %s43_s10 }
  0x2c   :  { %p517_p5 = scmp.ne.s32.totalorder %s43_s10, %s516_s27  ;;  %p522_p7 = scmp.lt.s32.totalorder %s516_s27, %s516_s27 }
  0x2e   :  { %p523_p8 = por %p522_p7, %p521_p6 }
  0x30   :  { %p524_p9 = pnand %p523_p8, %p517_p5 }
  0x32   :  { %527 = shalt.err (!%p524_p9)
}
  0x33   :  { %45 = dma.hbm_to_vmem [thread:$0]  %s707_s2, 128, %s43_s10, [#allocation7]  }
  0x34   :  { %s585_s6 = smov [#allocation9]   ;;  %s528_s11 = scalar_lea.hbm %s708_s3, 2048 }
  0x35   :  { %s51_s7 = sshll.u32 %s585_s6, 4  ;;  %p529_p10 = scmp.ne.s32.totalorder %s708_s3, %s528_s11  ;;  %s52_s7 = int_to_ptr.vmem [resolvable:$true] %s51_s7 }
  0x36   :  { %p532_p11 = scmp.lt.u32.totalorder %s528_s11, %s708_s3 }
  0x38   :  { %p534_p12 = pnand %p532_p11, %p529_p10 }
  0x3a   :  { %537 = shalt.err (!%p534_p12)
}
  0x3b   :  { %s538_s16 = scalar_lea.vmem %s52_s7, 2048  ;;  %p543_p0 = scmp.lt.s32.totalorder %s52_s7, %s52_s7 }
  0x3c   :  { %p539_p13 = scmp.ne.s32.totalorder %s52_s7, %s538_s16  ;;  %p544_p1 = scmp.lt.s32.totalorder %s538_s16, %s538_s16 }
  0x3e   :  { %p545_p2 = por %p544_p1, %p543_p0 }
  0x40   :  { %p546_p3 = pnand %p545_p2, %p539_p13 }
  0x42   :  { %549 = shalt.err (!%p546_p3)
}
  0x43   :  { %57 = dma.hbm_to_vmem [thread:$0]  %s708_s3, 2048, %s52_s7, [#allocation10], %s581_s28, %s581_s28, %s582_s29  }
  0x44   :  { %572 = dma.done.wait [#allocation4], 128  }
  0x45   :  { %573 = vsyncadd [#allocation4], 4294967168 }
  0x46   :  { %574 = dma.done.wait [#allocation7], 2176  }
  0x47   :  { %575 = vsyncadd [#allocation7], 4294965120 }
  0x48   :  { %576 = dma.done.wait [#allocation10], 2048  }
  0x49   :  { %577 = vsyncadd [#allocation10], 4294965248  ;;  %v586_v0 = vmov 0.0|0.0   ;;  %vm587_vm0 = vmmov 0   ;;  %v588_v1 = vmov 0.0   ;;  %v78_v2 = vld [vmem:[#allocation6] sm:$0xff] }
  0x4a   :  { %400 = vmatprep.subr.bf16.mxu0 %v586_v0  ;;  %362 = vmatprep.mubr.msk.f32.mxu0 %vm587_vm0, %v588_v1  ;;  %v79_v3 = vld [vmem:[#allocation6 + $0x8] sm:$0xff]  ;;  %v80_v4 = vld [vmem:[#allocation6 + $0x10] sm:$0xff]  ;;  %v81_v6 = vld [vmem:[#allocation6 + $0x18] sm:$0xff]  ;;  %s589_s29 = smov [#allocation11]  }
  0x4b   :  { %424 = vmatprep.subr.bf16.mxu1 %v586_v0  ;;  %397 = vmatprep.mubr.msk.f32.mxu1 %vm587_vm0, %v588_v1  ;;  %v401_v5 = vpack.c.bf16 %v79_v3, %v78_v2  ;;  %v404_v7 = vpack.c.bf16 %v81_v6, %v80_v4  ;;  %v82_v8 = vld [vmem:[#allocation6 + $0x20] sm:$0xff]  ;;  %v83_v9 = vld [vmem:[#allocation6 + $0x28] sm:$0xff]  ;;  %v172_v11 = vld [vmem:[#allocation9 + $0x8] sm:$0xff]  ;;  %s282_s17 = sshll.u32 %s589_s29, 4  ;;  %s283_s17 = int_to_ptr.vmem [resolvable:$true] %s282_s17 }
  0x4c   :  { %v171_v10 = vld [vmem:[#allocation9] sm:$0xff]  ;;  %v173_v12 = vld [vmem:[#allocation9 + $0x10] sm:$0xff]  ;;  %v174_v13 = vld [vmem:[#allocation9 + $0x18] sm:$0xff]  ;;  %v407_v14 = vpack.c.bf16 %v83_v9, %v82_v8  ;;  %s550_s1 = scalar_lea.vmem %s283_s17, 128  ;;  %p555_p5 = scmp.lt.s32.totalorder %s283_s17, %s283_s17 }
  0x4d   :  { %402 = vmatpush3.bf16.msra.mxu0 %v401_v5  ;;  %v425_v15 = vpack.c.bf16 %v172_v11, %v171_v10  ;;  %v84_v16 = vld [vmem:[#allocation6 + $0x30] sm:$0xff]  ;;  %v85_v17 = vld [vmem:[#allocation6 + $0x38] sm:$0xff]  ;;  %v428_v18 = vpack.c.bf16 %v174_v13, %v173_v12  ;;  %v175_v19 = vld [vmem:[#allocation9 + $0x20] sm:$0xff]  ;;  %p551_p4 = scmp.ne.s32.totalorder %s283_s17, %s550_s1  ;;  %p556_p6 = scmp.lt.s32.totalorder %s550_s1, %s550_s1 }
  0x4e   :  { %403 = vmatprep.subr.bf16.mxu0 %v586_v0  ;;  %v176_v20 = vld [vmem:[#allocation9 + $0x28] sm:$0xff]  ;;  %v410_v21 = vpack.c.bf16 %v85_v17, %v84_v16  ;;  %v86_v22 = vld [vmem:[#allocation6 + $0x40] sm:$0xff]  ;;  %v87_v23 = vld [vmem:[#allocation6 + $0x48] sm:$0xff] }
  0x4f   :  { %426 = vmatpush3.bf16.msra.mxu1 %v425_v15  ;;  %v431_v24 = vpack.c.bf16 %v176_v20, %v175_v19  ;;  %v177_v25 = vld [vmem:[#allocation9 + $0x30] sm:$0xff]  ;;  %v178_v26 = vld [vmem:[#allocation9 + $0x38] sm:$0xff]  ;;  %v413_v27 = vpack.c.bf16 %v87_v23, %v86_v22  ;;  %v88_v28 = vld [vmem:[#allocation6 + $0x50] sm:$0xff]  ;;  %p557_p7 = por %p556_p6, %p555_p5 }
  0x50   :  { %427 = vmatprep.subr.bf16.mxu1 %v586_v0  ;;  %v89_v29 = vld [vmem:[#allocation6 + $0x58] sm:$0xff]  ;;  %v434_v30 = vpack.c.bf16 %v178_v26, %v177_v25  ;;  %v179_v31 = vld [vmem:[#allocation9 + $0x40] sm:$0xff]  ;;  %v180_v32 = vld [vmem:[#allocation9 + $0x48] sm:$0xff] }
  0x51   :  { %405 = vmatpush3.bf16.msra.mxu0 %v404_v7  ;;  %v416_v33 = vpack.c.bf16 %v89_v29, %v88_v28  ;;  %v90_v34 = vld [vmem:[#allocation6 + $0x60] sm:$0xff]  ;;  %v91_v35 = vld [vmem:[#allocation6 + $0x68] sm:$0xff]  ;;  %v437_v36 = vpack.c.bf16 %v180_v32, %v179_v31  ;;  %v181_v37 = vld [vmem:[#allocation9 + $0x50] sm:$0xff]  ;;  %p558_p8 = pnand %p557_p7, %p551_p4 }
  0x52   :  { %406 = vmatprep.subr.bf16.mxu0 %v586_v0  ;;  %v182_v38 = vld [vmem:[#allocation9 + $0x58] sm:$0xff]  ;;  %v419_v39 = vpack.c.bf16 %v91_v35, %v90_v34  ;;  %v92_v40 = vld [vmem:[#allocation6 + $0x70] sm:$0xff]  ;;  %v93_v41 = vld [vmem:[#allocation6 + $0x78] sm:$0xff] }
  0x53   :  { %429 = vmatpush3.bf16.msra.mxu1 %v428_v18  ;;  %v440_v42 = vpack.c.bf16 %v182_v38, %v181_v37  ;;  %v183_v43 = vld [vmem:[#allocation9 + $0x60] sm:$0xff]  ;;  %v184_v44 = vld [vmem:[#allocation9 + $0x68] sm:$0xff]  ;;  %v422_v45 = vpack.c.bf16 %v93_v41, %v92_v40  ;;  %v77_v47 = vld [vmem:[#allocation3] sm:$0xff] }
  0x54   :  { %430 = vmatprep.subr.bf16.mxu1 %v586_v0  ;;  %v443_v46 = vpack.c.bf16 %v184_v44, %v183_v43  ;;  %v185_v48 = vld [vmem:[#allocation9 + $0x70] sm:$0xff]  ;;  %v186_v49 = vld [vmem:[#allocation9 + $0x78] sm:$0xff] }
  0x55   :  { %408 = vmatpush3.bf16.msra.mxu0 %v407_v14  ;;  %v446_v50 = vpack.c.bf16 %v186_v49, %v185_v48  ;;  %v293_v51 = vld [vmem:[#allocation8] ss:$0 sm:$0xff]  ;;  %v294_v56 = vld [vmem:[%s709_s4] ss:$0 sm:$0xff] }
  0x56   :  { %409 = vmatprep.subr.bf16.mxu0 %v586_v0 }
  0x57   :  { %432 = vmatpush3.bf16.msra.mxu1 %v431_v24 }
  0x58   :  { %433 = vmatprep.subr.bf16.mxu1 %v586_v0 }
  0x59   :  { %411 = vmatpush3.bf16.msra.mxu0 %v410_v21 }
  0x5a   :  { %412 = vmatprep.subr.bf16.mxu0 %v586_v0 }
  0x5b   :  { %435 = vmatpush3.bf16.msra.mxu1 %v434_v30 }
  0x5c   :  { %436 = vmatprep.subr.bf16.mxu1 %v586_v0 }
  0x5d   :  { %414 = vmatpush3.bf16.msra.mxu0 %v413_v27 }
  0x5e   :  { %415 = vmatprep.subr.bf16.mxu0 %v586_v0 }
  0x5f   :  { %438 = vmatpush3.bf16.msra.mxu1 %v437_v36 }
  0x60   :  { %439 = vmatprep.subr.bf16.mxu1 %v586_v0 }
  0x61   :  { %417 = vmatpush3.bf16.msra.mxu0 %v416_v33 }
  0x62   :  { %418 = vmatprep.subr.bf16.mxu0 %v586_v0 }
  0x63   :  { %441 = vmatpush3.bf16.msra.mxu1 %v440_v42 }
  0x64   :  { %442 = vmatprep.subr.bf16.mxu1 %v586_v0 }
  0x65   :  { %420 = vmatpush3.bf16.msra.mxu0 %v419_v39 }
  0x66   :  { %421 = vmatprep.subr.bf16.mxu0 %v586_v0 }
  0x67   :  { %444 = vmatpush3.bf16.msra.mxu1 %v443_v46 }
  0x68   :  { %445 = vmatprep.subr.bf16.mxu1 %v586_v0 }
  0x69   :  { %423 = vmatpush3.bf16.msra.mxu0 %v422_v45 }
  0x6b   :  { %447 = vmatpush3.bf16.msra.mxu1 %v446_v50 }
  0x6c   :  { %363 = vmatmul.mubr.f32.vlgmr.msra.gmra.mrb[0].mxu0 %v77_v47 }
 0x13f   :  { %v165_v52 = vpop.f32.mrb[0].mxu0 }
 0x140   :  { %v166_v53 = vadd.f32 %v293_v51, %v165_v52  ;;  %v364_v54 = vpop.f32.mrb[1].mxu0 }
 0x142   :  { %v169_v55 = vmax.f32 %v166_v53, 0.0 }
 0x144   :  { %398 = vmatmul.mubr.f32.vlgmr.msra.gmra.mrb[0].mxu1 %v169_v55 }
 0x217   :  { %v253_v57 = vpop.f32.mrb[0].mxu1 }
 0x218   :  { %v268_v58 = vadd.f32 %v294_v56, %v253_v57  ;;  %v399_v59 = vpop.f32.mrb[1].mxu1 }
 0x21a   :  { %v295_v60 = vmul.f32 -1.442695, %v268_v58 }
 0x21c   :  { %458 = vpow2.f32 %v295_v60 }
 0x226   :  { %v459_v61 = vpop.eup %458 }
 0x227   :  { %v272_v62 = vadd.f32 1.0, %v459_v61 }
 0x229   :  { %460 = vrcp.f32 %v272_v62 }
 0x233   :  { %v461_v63 = vpop.eup %460 }
 0x234   :  { %275 = vst [vmem:[#allocation11] sm:$0xff] %v461_v63 }
 0x235   :  { %561 = shalt.err (!%p558_p8)
}
 0x236   :  { %s562_s19 = scalar_lea.hbm %s710_s5, 128 }
 0x237   :  { %p563_p9 = scmp.ne.s32.totalorder %s710_s5, %s562_s19  ;;  %p566_p10 = scmp.lt.u32.totalorder %s562_s19, %s710_s5 }
 0x239   :  { %p568_p11 = pnand %p566_p10, %p563_p9 }
 0x23b   :  { %571 = shalt.err (!%p568_p11)
}
 0x23c   :  { %285 = dma.vmem_to_hbm [thread:$0]  %s283_s17, 128, %s710_s5, [#allocation5]  }
 0x23d   :  { %578 = dma.done.wait [#allocation5], 128  }
 0x23e   :  { %579 = vsyncadd [#allocation5], 4294967168 }
 0x23f   :  { %289 = vsyncpa [#allocation4], 1 }
 0x240   :  { %290 = vsyncpa [#allocation7], 1 }
 0x241   :  { %291 = vsyncpa [#allocation10], 1 }
 0x242   :  { %292 = vsyncpa [#allocation5], 1 }

</bundles_post_ra>
